<compile_context>
chip_gen: v7x
topology: tpu7x:2x2x1
jax: 0.10.0
libtpu: 0.0.40
codegen_flags: <defaults>
</compile_context>

<pallas_src>
import functools

import jax
import jax.numpy as jnp
from jax.experimental import pallas as pl
from jax.experimental.pallas import tpu as pltpu


def _conv3x3_bn_relu_kernel(x_ref, w_ref, b_ref, m_ref, o_ref, taps_ref,
                            *, H, W, C_in, C_out, NB):
    """One grid step: NB images of fused Conv3x3(pad=1) + folded-BN + ReLU.

    x_ref:    (NB, C_in, HW)   activations (channels on sublanes, pixels on lanes)
    w_ref:    (C_out, 9*C_in)  BN-folded weights, tap-major inner index (k*C_in+ic)
    b_ref:    (C_out, 1)       BN-folded bias column (f32)
    m_ref:    (9, HW)          precomputed zero-padding masks, one row per tap
    o_ref:    (NB, C_out, HW)  output block
    taps_ref: (9*C_in, HW)     VMEM scratch holding the stacked shifted taps
    """
    HW = H * W
    for i in range(NB):                       # NB is small & static -> unrolled
        x = x_ref[i]                          # (C_in, HW)
        k = 0
        for dy in (-1, 0, 1):
            for dx in (-1, 0, 1):
                s = dy * W + dx               # flat source offset of this tap
                if s == 0:
                    xs = x
                else:
                    # xs[:, p] = x[:, (p + s) mod HW]   (jnp.roll semantics)
                    xs = pltpu.roll(x, shift=(-s) % HW, axis=1)
                if (dy, dx) != (0, 0):
                    # Zero pixels whose source falls outside the image
                    # (resident host-precomputed mask, no per-step iota/div).
                    xs = xs * m_ref[pl.ds(k, 1), :]
                taps_ref[pl.ds(k * C_in, C_in), :] = xs
                k += 1
        # Single K = 9*C_in MXU contraction replaces 9 K=C_in matmuls + 8 adds.
        acc = jnp.dot(w_ref[...], taps_ref[...],
                      preferred_element_type=jnp.float32)
        o_ref[i] = jnp.maximum(acc + b_ref[...], 0.0).astype(o_ref.dtype)


def _fold_bn_into_conv(conv_w, conv_b, gamma, beta, run_mean, run_var, eps):
    """Fold eval-mode BatchNorm into the conv weights/bias (tiny, host-side)."""
    C_out, C_in = conv_w.shape[0], conv_w.shape[1]
    scale = gamma / jnp.sqrt(run_var + eps)                    # (C_out,)
    w_f = conv_w * scale[:, None, None, None]                  # (C_out,C_in,3,3)
    b_f = (conv_b - run_mean) * scale + beta                   # (C_out,)
    # Tap-major flattening: w_flat[oc, (ky*3+kx)*C_in + ic] = w_f[oc, ic, ky, kx]
    w_flat = jnp.transpose(w_f, (0, 2, 3, 1)).reshape(C_out, 9 * C_in)
    return w_flat, b_f.reshape(C_out, 1)


def _make_border_masks(H, W):
    """(9, H*W) masks: mask[k, p] = 1 if tap k's source pixel is in-bounds."""
    idx = jnp.arange(H * W, dtype=jnp.int32)
    row, col = idx // W, idx % W
    masks = []
    for dy in (-1, 0, 1):
        for dx in (-1, 0, 1):
            valid = ((row + dy >= 0) & (row + dy < H) &
                     (col + dx >= 0) & (col + dx < W))
            masks.append(valid)
    return jnp.stack(masks).astype(jnp.float32)


def _pick_images_per_step(N, C_in, C_out, HW, in_itemsize,
                          vmem_block_budget=8 << 20):
    """Images per grid step: amortize step overhead, keep >=2 steps (v7x dual
    TC) and keep double-buffered in/out blocks well under the VMEM budget."""
    per_img = 2 * HW * (C_in * in_itemsize + C_out * 4)   # dbl-buffered blocks
    cap = max(1, vmem_block_budget // per_img)
    if N >= 2:
        cap = max(1, min(cap, N // 2))
    nb = 1
    for d in range(1, int(cap) + 1):                      # largest divisor of N
        if N % d == 0:
            nb = d
    return nb


def conv_bn_relu_apply(x, w_flat, b_col, masks, *, compute_dtype=jnp.float32):
    """ReLU(BN_eval(Conv3x3_pad1(x))) as one fused Pallas kernel.

    x:      (N, C_in, H, W) f32 (NCHW)
    w_flat: (C_out, 9*C_in) f32   BN-folded, tap-major weights
    b_col:  (C_out, 1) f32        BN-folded bias
    masks:  (9, H*W) f32          border masks from _make_border_masks
    returns (N, C_out, H, W) f32
    """
    N, C_in, H, W = x.shape
    C_out = w_flat.shape[0]
    HW = H * W

    # Free reshape: NCHW row-major -> (N, C, H*W). No transpose, no HBM copy.
    x_flat = x.reshape(N, C_in, HW)
    if x_flat.dtype != compute_dtype:
        x_flat = x_flat.astype(compute_dtype)       # bf16 path (v5e MXU)
    w_cd = w_flat.astype(compute_dtype)
    m_cd = masks.astype(compute_dtype)

    NB = _pick_images_per_step(N, C_in, C_out, HW,
                               jnp.dtype(compute_dtype).itemsize)
    grid = (N // NB,)

    kernel = functools.partial(_conv3x3_bn_relu_kernel,
                               H=H, W=W, C_in=C_in, C_out=C_out, NB=NB)

    flops = 2 * N * HW * 9 * C_in * C_out
    bytes_accessed = (x_flat.size * x_flat.dtype.itemsize
                      + N * C_out * HW * 4
                      + w_cd.size * w_cd.dtype.itemsize
                      + m_cd.size * m_cd.dtype.itemsize
                      + C_out * 4)

    out_flat = pl.pallas_call(
        kernel,
        out_shape=jax.ShapeDtypeStruct((N, C_out, HW), jnp.float32),
        grid_spec=pltpu.PrefetchScalarGridSpec(
            num_scalar_prefetch=0,
            grid=grid,
            in_specs=[
                pl.BlockSpec((NB, C_in, HW), lambda n: (n, 0, 0)),
                pl.BlockSpec((C_out, 9 * C_in), lambda n: (0, 0)),  # resident
                pl.BlockSpec((C_out, 1), lambda n: (0, 0)),         # resident
                pl.BlockSpec((9, HW), lambda n: (0, 0)),            # resident
            ],
            out_specs=pl.BlockSpec((NB, C_out, HW), lambda n: (n, 0, 0)),
            scratch_shapes=[pltpu.VMEM((9 * C_in, HW), compute_dtype)],
        ),
        compiler_params=pltpu.CompilerParams(
            dimension_semantics=("parallel",),
        ),
        cost_estimate=pl.CostEstimate(
            flops=flops, transcendentals=0, bytes_accessed=bytes_accessed),
    )(x_flat, w_cd, b_col, m_cd)

    return out_flat.reshape(N, C_out, H, W)


def dummy_encoder_forward(x, conv_w, conv_b, gamma, beta, run_mean, run_var,
                          eps=1e-5, compute_dtype=jnp.float32):
    """Convenience one-shot API (folds BN per call; prefer DummyEncoderPallas,
    which caches the folded weights / masks)."""
    w_flat, b_col = _fold_bn_into_conv(conv_w, conv_b, gamma, beta,
                                       run_mean, run_var, eps)
    masks = _make_border_masks(x.shape[-2], x.shape[-1])
    return conv_bn_relu_apply(x, w_flat, b_col, masks,
                              compute_dtype=compute_dtype)


class DummyEncoderPallas:
    """Pallas equivalent of the PyTorch DummyEncoder (eval-mode forward)."""

    def __init__(self, in_channels=3, hidden_channels=8, key=None, eps=1e-5,
                 compute_dtype=jnp.float32):
        if key is None:
            key = jax.random.PRNGKey(42)
        kw, kb, kg, kbe, km, kv = jax.random.split(key, 6)
        fan_in = in_channels * 3 * 3
        bound = 1.0 / (fan_in ** 0.5)
        self.conv_w = jax.random.uniform(
            kw, (hidden_channels, in_channels, 3, 3), jnp.float32, -bound, bound)
        self.conv_b = jax.random.uniform(
            kb, (hidden_channels,), jnp.float32, -bound, bound)
        # Non-trivial BN params so the folding path is actually exercised.
        self.gamma = jax.random.uniform(kg, (hidden_channels,), jnp.float32, 0.5, 1.5)
        self.beta = jax.random.uniform(kbe, (hidden_channels,), jnp.float32, -0.5, 0.5)
        self.running_mean = jax.random.uniform(km, (hidden_channels,), jnp.float32, -0.5, 0.5)
        self.running_var = jax.random.uniform(kv, (hidden_channels,), jnp.float32, 0.5, 1.5)
        self.eps = eps
        self.compute_dtype = compute_dtype

        # Hoisted out of the per-call forward path: BN fold + tap-major pack.
        self._w_flat, self._b_col = _fold_bn_into_conv(
            self.conv_w, self.conv_b, self.gamma, self.beta,
            self.running_mean, self.running_var, eps)
        self._mask_cache = {}
        self._apply = jax.jit(functools.partial(
            conv_bn_relu_apply, compute_dtype=compute_dtype))

    def __call__(self, x):
        H, W = x.shape[-2], x.shape[-1]
        masks = self._mask_cache.get((H, W))
        if masks is None:
            masks = _make_border_masks(H, W)
            self._mask_cache[(H, W)] = masks
        return self._apply(x, self._w_flat, self._b_col, masks)


if __name__ == "__main__":
    key = jax.random.PRNGKey(0)
    # Small shapes consistent with the module: batch=2, in_channels=3, 16x16.
    x = jax.random.normal(key, (2, 3, 16, 16), dtype=jnp.float32)

    model = DummyEncoderPallas(in_channels=3, hidden_channels=8)
    out = jax.block_until_ready(model(x))
    assert out.shape == (2, 8, 16, 16), out.shape

    # Pure-JAX reference: Conv2d(3x3, pad=1) -> BatchNorm2d(eval) -> ReLU.
    conv = jax.lax.conv_general_dilated(
        x, model.conv_w, window_strides=(1, 1), padding=((1, 1), (1, 1)),
        dimension_numbers=("NCHW", "OIHW", "NCHW"))
    conv = conv + model.conv_b[None, :, None, None]
    scale = model.gamma / jnp.sqrt(model.running_var + model.eps)
    ref = jnp.maximum(
        (conv - model.running_mean[None, :, None, None])
        * scale[None, :, None, None]
        + model.beta[None, :, None, None],
        0.0,
    )

    err = float(jnp.max(jnp.abs(out - ref)))
    assert jnp.allclose(out, ref, atol=1e-4, rtol=1e-4), err

    print("KERNEL_OK")
</pallas_src>

<mosaic_0001>
module attributes {stable_mosaic.version = 11 : i64} {
  func.func @_conv3x3_bn_relu_kernel(%arg0: i32, %arg1: memref<1x3x256xf32, #tpu.memory_space<vmem>>, %arg2: memref<8x27xf32, #tpu.memory_space<vmem>>, %arg3: memref<8x1xf32, #tpu.memory_space<vmem>>, %arg4: memref<9x256xf32, #tpu.memory_space<vmem>>, %arg5: memref<1x8x256xf32, #tpu.memory_space<vmem>>, %arg6: memref<27x256xf32, #tpu.memory_space<vmem>>) attributes {dimension_semantics = [#tpu.dimension_semantics<parallel>], iteration_bounds = array<i64: 2>, scalar_prefetch = 0 : i64, scratch_operands = 1 : i64, tpu.core_type = #tpu.core_type<tc>, window_params = [{transform_indices = @transform_0, window_bounds = array<i64: 1, 3, 256>}, {pipeline_mode = #tpu.pipeline_mode<synchronous>, transform_indices = @transform_1, window_bounds = array<i64: 8, 27>}, {pipeline_mode = #tpu.pipeline_mode<synchronous>, transform_indices = @transform_2, window_bounds = array<i64: 8, 1>}, {pipeline_mode = #tpu.pipeline_mode<synchronous>, transform_indices = @transform_3, window_bounds = array<i64: 9, 256>}, {transform_indices = @transform_4, window_bounds = array<i64: 1, 8, 256>}]} {
    %c0 = arith.constant 0 : index
    %c0_0 = arith.constant 0 : index
    %c0_1 = arith.constant 0 : index
    %0 = vector.load %arg1[%c0, %c0_0, %c0_1] : memref<1x3x256xf32, #tpu.memory_space<vmem>>, vector<1x3x256xf32>
    %1 = vector.shape_cast %0 : vector<1x3x256xf32> to vector<3x256xf32>
    %c17_i32 = arith.constant 17 : i32
    %2 = tpu.dynamic_rotate %1 by %c17_i32 dim 1 : vector<3x256xf32>, i32 -> vector<3x256xf32>
    %c0_2 = arith.constant 0 : index
    %c0_3 = arith.constant 0 : index
    %3 = vector.load %arg4[%c0_2, %c0_3] : memref<9x256xf32, #tpu.memory_space<vmem>>, vector<1x256xf32>
    %4 = vector.broadcast %3 : vector<1x256xf32> to vector<3x256xf32>
    %5 = arith.mulf %2, %4 : vector<3x256xf32>
    %c0_4 = arith.constant 0 : index
    %c0_5 = arith.constant 0 : index
    %6 = vector.load %arg6[%c0_4, %c0_5] : memref<27x256xf32, #tpu.memory_space<vmem>>, vector<3x256xf32>
    tpu.vector_store %arg6[%c0_4, %c0_5], %5 {strides = array<i32>} : memref<27x256xf32, #tpu.memory_space<vmem>>, vector<3x256xf32>,
    %c16_i32 = arith.constant 16 : i32
    %7 = tpu.dynamic_rotate %1 by %c16_i32 dim 1 : vector<3x256xf32>, i32 -> vector<3x256xf32>
    %c1 = arith.constant 1 : index
    %c0_6 = arith.constant 0 : index
    %8 = vector.load %arg4[%c1, %c0_6] : memref<9x256xf32, #tpu.memory_space<vmem>>, vector<1x256xf32>
    %9 = vector.broadcast %8 : vector<1x256xf32> to vector<3x256xf32>
    %10 = arith.mulf %7, %9 : vector<3x256xf32>
    %c3 = arith.constant 3 : index
    %c0_7 = arith.constant 0 : index
    %11 = vector.load %arg6[%c3, %c0_7] : memref<27x256xf32, #tpu.memory_space<vmem>>, vector<3x256xf32>
    tpu.vector_store %arg6[%c3, %c0_7], %10 {strides = array<i32>} : memref<27x256xf32, #tpu.memory_space<vmem>>, vector<3x256xf32>,
    %c15_i32 = arith.constant 15 : i32
    %12 = tpu.dynamic_rotate %1 by %c15_i32 dim 1 : vector<3x256xf32>, i32 -> vector<3x256xf32>
    %c2 = arith.constant 2 : index
    %c0_8 = arith.constant 0 : index
    %13 = vector.load %arg4[%c2, %c0_8] : memref<9x256xf32, #tpu.memory_space<vmem>>, vector<1x256xf32>
    %14 = vector.broadcast %13 : vector<1x256xf32> to vector<3x256xf32>
    %15 = arith.mulf %12, %14 : vector<3x256xf32>
    %c6 = arith.constant 6 : index
    %c0_9 = arith.constant 0 : index
    %16 = vector.load %arg6[%c6, %c0_9] : memref<27x256xf32, #tpu.memory_space<vmem>>, vector<3x256xf32>
    tpu.vector_store %arg6[%c6, %c0_9], %15 {strides = array<i32>} : memref<27x256xf32, #tpu.memory_space<vmem>>, vector<3x256xf32>,
    %c1_i32 = arith.constant 1 : i32
    %17 = tpu.dynamic_rotate %1 by %c1_i32 dim 1 : vector<3x256xf32>, i32 -> vector<3x256xf32>
    %c3_10 = arith.constant 3 : index
    %c0_11 = arith.constant 0 : index
    %18 = vector.load %arg4[%c3_10, %c0_11] : memref<9x256xf32, #tpu.memory_space<vmem>>, vector<1x256xf32>
    %19 = vector.broadcast %18 : vector<1x256xf32> to vector<3x256xf32>
    %20 = arith.mulf %17, %19 : vector<3x256xf32>
    %c9 = arith.constant 9 : index
    %c0_12 = arith.constant 0 : index
    %21 = vector.load %arg6[%c9, %c0_12] : memref<27x256xf32, #tpu.memory_space<vmem>>, vector<3x256xf32>
    tpu.vector_store %arg6[%c9, %c0_12], %20 {strides = array<i32>} : memref<27x256xf32, #tpu.memory_space<vmem>>, vector<3x256xf32>,
    %c12 = arith.constant 12 : index
    %c0_13 = arith.constant 0 : index
    %22 = vector.load %arg6[%c12, %c0_13] : memref<27x256xf32, #tpu.memory_space<vmem>>, vector<3x256xf32>
    tpu.vector_store %arg6[%c12, %c0_13], %1 {strides = array<i32>} : memref<27x256xf32, #tpu.memory_space<vmem>>, vector<3x256xf32>,
    %c255_i32 = arith.constant 255 : i32
    %23 = tpu.dynamic_rotate %1 by %c255_i32 dim 1 : vector<3x256xf32>, i32 -> vector<3x256xf32>
    %c5 = arith.constant 5 : index
    %c0_14 = arith.constant 0 : index
    %24 = vector.load %arg4[%c5, %c0_14] : memref<9x256xf32, #tpu.memory_space<vmem>>, vector<1x256xf32>
    %25 = vector.broadcast %24 : vector<1x256xf32> to vector<3x256xf32>
    %26 = arith.mulf %23, %25 : vector<3x256xf32>
    %c15 = arith.constant 15 : index
    %c0_15 = arith.constant 0 : index
    %27 = vector.load %arg6[%c15, %c0_15] : memref<27x256xf32, #tpu.memory_space<vmem>>, vector<3x256xf32>
    tpu.vector_store %arg6[%c15, %c0_15], %26 {strides = array<i32>} : memref<27x256xf32, #tpu.memory_space<vmem>>, vector<3x256xf32>,
    %c241_i32 = arith.constant 241 : i32
    %28 = tpu.dynamic_rotate %1 by %c241_i32 dim 1 : vector<3x256xf32>, i32 -> vector<3x256xf32>
    %c6_16 = arith.constant 6 : index
    %c0_17 = arith.constant 0 : index
    %29 = vector.load %arg4[%c6_16, %c0_17] : memref<9x256xf32, #tpu.memory_space<vmem>>, vector<1x256xf32>
    %30 = vector.broadcast %29 : vector<1x256xf32> to vector<3x256xf32>
    %31 = arith.mulf %28, %30 : vector<3x256xf32>
    %c18 = arith.constant 18 : index
    %c0_18 = arith.constant 0 : index
    %32 = vector.load %arg6[%c18, %c0_18] : memref<27x256xf32, #tpu.memory_space<vmem>>, vector<3x256xf32>
    tpu.vector_store %arg6[%c18, %c0_18], %31 {strides = array<i32>} : memref<27x256xf32, #tpu.memory_space<vmem>>, vector<3x256xf32>,
    %c240_i32 = arith.constant 240 : i32
    %33 = tpu.dynamic_rotate %1 by %c240_i32 dim 1 : vector<3x256xf32>, i32 -> vector<3x256xf32>
    %c7 = arith.constant 7 : index
    %c0_19 = arith.constant 0 : index
    %34 = vector.load %arg4[%c7, %c0_19] : memref<9x256xf32, #tpu.memory_space<vmem>>, vector<1x256xf32>
    %35 = vector.broadcast %34 : vector<1x256xf32> to vector<3x256xf32>
    %36 = arith.mulf %33, %35 : vector<3x256xf32>
    %c21 = arith.constant 21 : index
    %c0_20 = arith.constant 0 : index
    %37 = vector.load %arg6[%c21, %c0_20] : memref<27x256xf32, #tpu.memory_space<vmem>>, vector<3x256xf32>
    tpu.vector_store %arg6[%c21, %c0_20], %36 {strides = array<i32>} : memref<27x256xf32, #tpu.memory_space<vmem>>, vector<3x256xf32>,
    %c239_i32 = arith.constant 239 : i32
    %38 = tpu.dynamic_rotate %1 by %c239_i32 dim 1 : vector<3x256xf32>, i32 -> vector<3x256xf32>
    %c8 = arith.constant 8 : index
    %c0_21 = arith.constant 0 : index
    %39 = vector.load %arg4[%c8, %c0_21] : memref<9x256xf32, #tpu.memory_space<vmem>>, vector<1x256xf32>
    %40 = vector.broadcast %39 : vector<1x256xf32> to vector<3x256xf32>
    %41 = arith.mulf %38, %40 : vector<3x256xf32>
    %c24 = arith.constant 24 : index
    %c0_22 = arith.constant 0 : index
    %42 = vector.load %arg6[%c24, %c0_22] : memref<27x256xf32, #tpu.memory_space<vmem>>, vector<3x256xf32>
    tpu.vector_store %arg6[%c24, %c0_22], %41 {strides = array<i32>} : memref<27x256xf32, #tpu.memory_space<vmem>>, vector<3x256xf32>,
    %c0_23 = arith.constant 0 : index
    %c0_24 = arith.constant 0 : index
    %43 = vector.load %arg2[%c0_23, %c0_24] : memref<8x27xf32, #tpu.memory_space<vmem>>, vector<8x27xf32>
    %c0_25 = arith.constant 0 : index
    %c0_26 = arith.constant 0 : index
    %44 = vector.load %arg6[%c0_25, %c0_26] : memref<27x256xf32, #tpu.memory_space<vmem>>, vector<27x256xf32>
    %cst = arith.constant dense<0.000000e+00> : vector<8x256xf32>
    %45 = tpu.matmul %43, %44, %cst {dimension_numbers = #tpu.dot_dimension_numbers<[1], [0], [0], [1], [0, 0, 1, 1], [], []>} : vector<8x27xf32>, vector<27x256xf32>, vector<8x256xf32> -> vector<8x256xf32>
    %c0_27 = arith.constant 0 : index
    %c0_28 = arith.constant 0 : index
    %46 = vector.load %arg3[%c0_27, %c0_28] : memref<8x1xf32, #tpu.memory_space<vmem>>, vector<8x1xf32>
    %47 = vector.broadcast %46 : vector<8x1xf32> to vector<8x256xf32>
    %48 = arith.addf %45, %47 : vector<8x256xf32>
    %cst_29 = arith.constant 0.000000e+00 : f32
    %49 = vector.broadcast %cst_29 : f32 to vector<8x256xf32>
    %50 = arith.maximumf %48, %49 : vector<8x256xf32>
    %c0_30 = arith.constant 0 : index
    %c0_31 = arith.constant 0 : index
    %c0_32 = arith.constant 0 : index
    %51 = vector.load %arg5[%c0_30, %c0_31, %c0_32] : memref<1x8x256xf32, #tpu.memory_space<vmem>>, vector<1x8x256xf32>
    %52 = vector.shape_cast %51 : vector<1x8x256xf32> to vector<8x256xf32>
    %53 = vector.shape_cast %50 : vector<8x256xf32> to vector<1x8x256xf32>
    tpu.vector_store %arg5[%c0_30, %c0_31, %c0_32], %53 {strides = array<i32>} : memref<1x8x256xf32, #tpu.memory_space<vmem>>, vector<1x8x256xf32>,
    return
  }
  func.func @transform_0(%arg0: i32) -> (i32, i32, i32) {
    %c0_i32 = arith.constant 0 : i32
    %c0_i32_0 = arith.constant 0 : i32
    %c0_i32_1 = arith.constant 0 : i32
    return %arg0, %c0_i32, %c0_i32_0 : i32, i32, i32
  }
  func.func @transform_1(%arg0: i32) -> (i32, i32) {
    %c0_i32 = arith.constant 0 : i32
    %c0_i32_0 = arith.constant 0 : i32
    %c0_i32_1 = arith.constant 0 : i32
    return %c0_i32, %c0_i32_0 : i32, i32
  }
  func.func @transform_2(%arg0: i32) -> (i32, i32) {
    %c0_i32 = arith.constant 0 : i32
    %c0_i32_0 = arith.constant 0 : i32
    %c0_i32_1 = arith.constant 0 : i32
    return %c0_i32, %c0_i32_0 : i32, i32
  }
  func.func @transform_3(%arg0: i32) -> (i32, i32) {
    %c0_i32 = arith.constant 0 : i32
    %c0_i32_0 = arith.constant 0 : i32
    %c0_i32_1 = arith.constant 0 : i32
    return %c0_i32, %c0_i32_0 : i32, i32
  }
  func.func @transform_4(%arg0: i32) -> (i32, i32, i32) {
    %c0_i32 = arith.constant 0 : i32
    %c0_i32_0 = arith.constant 0 : i32
    %c0_i32_1 = arith.constant 0 : i32
    return %arg0, %c0_i32, %c0_i32_0 : i32, i32, i32
  }
}

</mosaic_0001>

<bundles_post_ra>
// kernel: conv_bn_relu_apply.1
= control target key start
LH: loop header
LB: loop body
LE: loop exit
PB: predicated region body
PF: predicated region fallthrough
CT: control target
= control target key end

     0   :  { %s694_s15 = smov 0   ;;  %s791_s0 = inlined_call_operand.vmem [shape: f32[2,3,256], index: 0, kind: input, shape index: {}]   ;;  %s792_s1 = inlined_call_operand.vmem [shape: f32[8,27], index: 1, kind: input, shape index: {}]   ;;  %s793_s2 = inlined_call_operand.vmem [shape: f32[8,1], index: 2, kind: input, shape index: {}]   ;;  %s794_s3 = inlined_call_operand.vmem [shape: f32[9,256], index: 3, kind: input, shape index: {}]   ;;  %s795_s4 = inlined_call_operand.vmem [shape: f32[2,8,256], index: 4, kind: output, shape index: {}]  }
   0x1 LB: > { %s595_s16 = sadd.s32 4294967295, %s656_s15   ;;  %p599_p0 = scmp.ge.s32.totalorder %s656_s15, 1  ;;  %s656_s15 = sphi %s694_s15, %s14_s15  }
   0x2   : > { %p162_p1 = scmp.lt.s32.totalorder %s656_s15, 3 }
   0x4   : > { %p163_p2 = pnand %p599_p0, %p162_p1 }
   0x5   : > { %p188_p3 = scmp.lt.s32.totalorder (!%p163_p2), %s595_s16, 1  ;;  %s658_s21 = smov (!%p163_p2), 15   ;;  %v666_v3 = vmov (!%p163_p2), 0.0   ;;  %v448_v4 = vld [vmem:[%s793_s2] sm:$0xff] (!%p163_p2)  ;;  %v667_v5 = vmov (!%p163_p2), 0   ;;  %v206_v6 = vlaneseq (!%p163_p2)  ;;  %vm458_vm8 = vcmask (!%p163_p2), 1042432  }
   0x6   : > { %166 = sbr.rel (%p163_p2) target bundleno = 395 (0x18b), region = 36  ;;  %s659_s22 = smov (!%p163_p2), 16   ;;  %529 = vmatprep.mubr.f32.mxu0 (!%p163_p2), %v666_v3  ;;  %647 = vset.pattern.permute.xlu0 (!%p163_p2), %v667_v5  ;;  %v605_v11 = vld [vmem:[%s794_s3 + $0x2] ss:$8 sm:$0x3] (!%p163_p2)  ;;  %vm668_vm9 = vmmov (!%p163_p2), 1  }
   0x7   : > { %s660_s23 = smov (!%p163_p2), 1   ;;  %s661_s24 = smov (!%p163_p2), 127   ;;  %v214_v7 = vshrl.u32 (!%p163_p2), %v206_v6, 7  ;;  %v711_v8 = vand.u32 (!%p163_p2), 127, %v206_v6  ;;  %vm623_vm10 = vmpackc.low (!%p163_p2), %vm458_vm8, %vm668_vm9  ;;  %vm454_vm11 = vcmask (!%p163_p2), 220160  }
   0x8   : > { %s662_s25 = smov (!%p163_p2), 17   ;;  %s663_s26 = smov (!%p163_p2), 113   ;;  %v606_v16 = vld [vmem:[%s794_s3 + $0x3] ss:$8 sm:$0x3] (!%p163_p2) }
   0x9   : > { %s664_s27 = smov (!%p163_p2), 112   ;;  %s665_s28 = smov (!%p163_p2), 111   ;;  %v713_v9 = vsub.s32 (!%p163_p2), 0, %v214_v7  ;;  %v715_v10 = vsub.s32 (!%p163_p2), 1, %v214_v7  ;;  %vm261_vm0 = vcmp.lt.s32.totalorder (!%p163_p2), %v711_v8, 15  ;;  %vm293_vm1 = vcmp.lt.s32.totalorder (!%p163_p2), %v711_v8, 1 }
   0xa   : > { %v604_v17 = vld [vmem:[%s794_s3 + $0x1] ss:$8 sm:$0x3] (!%p163_p2)  ;;  %vm231_vm2 = vcmp.lt.s32.totalorder (!%p163_p2), %v711_v8, 16  ;;  %vm327_vm3 = vcmp.lt.s32.totalorder (!%p163_p2), %v711_v8, 127  ;;  %vm208_vm4 = vcmp.lt.s32.totalorder (!%p163_p2), %v711_v8, 17 }
   0xb   : > { %v270_v14 = vrot.slane (!%p163_p2), %v605_v11, %v713_v9  ;;  %v274_v15 = vrot.slane (!%p163_p2), %v605_v11, %v715_v10  ;;  %v302_v22 = vrot.slane (!%p163_p2), %v606_v16, %v713_v9  ;;  %v306_v23 = vrot.slane (!%p163_p2), %v606_v16, %v715_v10  ;;  %v607_v24 = vld [vmem:[%s794_s3 + $0x5] ss:$8 sm:$0x3] (!%p163_p2)  ;;  %v211_v43 = vld [vmem:[%s794_s3] ss:$8 sm:$0x3] (!%p163_p2) }
   0xc   : > { %v240_v27 = vrot.slane (!%p163_p2), %v604_v17, %v713_v9  ;;  %v244_v28 = vrot.slane (!%p163_p2), %v604_v17, %v715_v10  ;;  %v336_v33 = vrot.slane (!%p163_p2), %v607_v24, %v713_v9  ;;  %v340_v34 = vrot.slane (!%p163_p2), %v607_v24, %v715_v10  ;;  %v608_v56 = vld [vmem:[%s794_s3 + $0x6] ss:$8 sm:$0x3] (!%p163_p2)  ;;  %v609_v3 = vld [vmem:[%s794_s3 + $0x7] ss:$8 sm:$0x3] (!%p163_p2) }
   0xd   : > { %s797_s16 = smov (!%p188_p3, %s595_s16), 1  ;;  %v216_v54 = vrot.slane %v211_v43, %v713_v9  ;;  %v220_v55 = vrot.slane %v211_v43, %v715_v10  ;;  %vm359_vm5 = vcmp.lt.s32.totalorder %v711_v8, 113  ;;  %vm389_vm6 = vcmp.lt.s32.totalorder %v711_v8, 112 }
   0xe   : > { %s616_s17 = sshll.u32 %s797_s16, 3  ;;  %vm419_vm7 = vcmp.lt.s32.totalorder %v711_v8, 111  ;;  %v439_v8 = vld [vmem:[%s792_s1] sm:$0xff] }
   0xf   : > { %s192_s20 = scalar_lea.vmem %s791_s0, %s616_s17 }
  0x10   : > { %v198_v0 = vld [vmem:[%s192_s20] sm:$0x77] }
  0x11   : > { %257 = vrot.lane.b32.xlu1 %v198_v0, %s658_s21  ;;  %322 = vst [vmem:[#allocation2 + $0x18] sm:$0x70] %v198_v0  ;;  %227 = vrot.lane.b32.xlu0 %v198_v0, %s659_s22  ;;  %v200_v1 = vcombine.high %v198_v0, %v198_v0  ;;  %v319_v2 = vcombine.low %v198_v0, %v198_v0 }
  0x13   : > { %321 = vst [vmem:[#allocation2 + $0x10] sm:$0x70] %v319_v2  ;;  %v372_v2 = vrot.slane %v608_v56, %v715_v10 }
  0x15   : > { %289 = vrot.lane.b32.xlu0 %v198_v0, %s660_s23  ;;  %259 = vrot.lane.b32.xlu1 %v200_v1, %s658_s21 }
  0x19   : > { %291 = vrot.lane.b32.xlu1 %v200_v1, %s660_s23  ;;  %229 = vrot.lane.b32.xlu0 %v200_v1, %s659_s22 }
  0x1d   : > { %325 = vrot.lane.b32.xlu1 %v200_v1, %s661_s24  ;;  %323 = vrot.lane.b32.xlu0 %v198_v0, %s661_s24 }
  0x21   : > { %204 = vrot.lane.b32.xlu1 %v200_v1, %s662_s25  ;;  %202 = vrot.lane.b32.xlu0 %v198_v0, %s662_s25  ;;  %s617_s25 = sshll.u32 %s797_s16, 4 }
  0x25   : > { %357 = vrot.lane.b32.xlu1 %v200_v1, %s663_s26  ;;  %355 = vrot.lane.b32.xlu0 %v198_v0, %s663_s26 }
  0x29   : > { %387 = vrot.lane.b32.xlu1 %v200_v1, %s664_s27  ;;  %385 = vrot.lane.b32.xlu0 %v198_v0, %s664_s27 }
  0x2d   : > { %417 = vrot.lane.b32.xlu1 %v200_v1, %s665_s28  ;;  %415 = vrot.lane.b32.xlu0 %v198_v0, %s665_s28  ;;  %v368_v1 = vrot.slane %v608_v56, %v713_v9  ;;  %s197_s28 = scalar_lea.vmem %s795_s4, %s617_s25 }
  0x31   : > { %451 = vperm.xlu0 %647, %v448_v4  }
  0x83   : > { %v258_v12 = vpop.permute.xlu1 %257  ;;  %v228_v13 = vpop.permute.xlu0 %227 }
  0x87   : > { %v290_v18 = vpop.permute.xlu0 %289  ;;  %v260_v19 = vpop.permute.xlu1 %259 }
  0x88   : > { %v262_v20 = vsel %vm261_vm0, %v258_v12, %v260_v19  ;;  %v263_v21 = vsel %vm261_vm0, %v260_v19, %v258_v12 }
  0x89   : > { %v277_v25 = vmul.f32 %v270_v14, %v263_v21  ;;  %v278_v26 = vmul.f32 %v274_v15, %v262_v20  ;;  %v402_v14 = vrot.slane %v609_v3, %v715_v10  ;;  %v610_v15 = vld [vmem:[%s794_s3 + $0x10] ss:$8 sm:$0x3] }
  0x8a   : > { %v428_v24 = vrot.slane %v610_v15, %v713_v9 }
  0x8b   : > { %v281_v29 = vrot.slane %v277_v25, 2  ;;  %v282_v30 = vrot.slane %v278_v26, 2  ;;  %v292_v31 = vpop.permute.xlu1 %291  ;;  %v230_v32 = vpop.permute.xlu0 %229  ;;  %v432_v25 = vrot.slane %v610_v15, %v715_v10 }
  0x8c   : > { %v294_v35 = vsel %vm293_vm1, %v290_v18, %v292_v31  ;;  %v295_v36 = vsel %vm293_vm1, %v292_v31, %v290_v18  ;;  %v232_v37 = vsel %vm231_vm2, %v228_v13, %v230_v32  ;;  %v233_v38 = vsel %vm231_vm2, %v230_v32, %v228_v13 }
  0x8d   : > { %285 = vst [vmem:[#allocation2 + $0x10] ss:$-12 sps:$4 sm:$0xc1] %v281_v29   ;;  %286 = vst [vmem:[#allocation2 + $0x18] ss:$-12 sps:$4 sm:$0xc1] %v282_v30   ;;  %v309_v39 = vmul.f32 %v302_v22, %v295_v36  ;;  %v310_v40 = vmul.f32 %v306_v23, %v294_v35  ;;  %v247_v41 = vmul.f32 %v240_v27, %v233_v38 }
  0x8e   : > { %v248_v42 = vmul.f32 %v244_v28, %v232_v37  ;;  %v398_v13 = vrot.slane %v609_v3, %v713_v9 }
  0x8f   : > { %v313_v44 = vrot.slane %v309_v39, 7  ;;  %v314_v45 = vrot.slane %v310_v40, 7  ;;  %v251_v46 = vrot.slane %v247_v41, 5  ;;  %v326_v48 = vpop.permute.xlu1 %325  ;;  %v324_v49 = vpop.permute.xlu0 %323 }
  0x90   : > { %v252_v47 = vrot.slane %v248_v42, 5  ;;  %v328_v50 = vsel %vm327_vm3, %v324_v49, %v326_v48  ;;  %v329_v51 = vsel %vm327_vm3, %v326_v48, %v324_v49 }
  0x91   : > { %317 = vst [vmem:[#allocation2 + $0x10] sm:$0xe] %v313_v44  ;;  %318 = vst [vmem:[#allocation2 + $0x18] sm:$0xe] %v314_v45  ;;  %v343_v52 = vmul.f32 %v336_v33, %v328_v50  ;;  %v344_v53 = vmul.f32 %v340_v34, %v329_v51 }
  0x92   : > { %255 = vst [vmem:[#allocation2] sm:$0x38] %v251_v46  ;;  %256 = vst [vmem:[#allocation2 + $0x8] sm:$0x38] %v252_v47 }
  0x93   : > { %v347_v57 = vrot.slane %v343_v52, 1  ;;  %v348_v58 = vrot.slane %v344_v53, 1  ;;  %v205_v59 = vpop.permute.xlu1 %204  ;;  %v203_v60 = vpop.permute.xlu0 %202 }
  0x94   : > { %v209_v61 = vsel %vm208_vm4, %v203_v60, %v205_v59  ;;  %v210_v62 = vsel %vm208_vm4, %v205_v59, %v203_v60 }
  0x95   : > { %351 = vst [vmem:[#allocation2 + $0x20] ss:$-12 sps:$4 sm:$0x83] %v347_v57   ;;  %352 = vst [vmem:[#allocation2 + $0x28] ss:$-12 sps:$4 sm:$0x83] %v348_v58   ;;  %v223_v63 = vmul.f32 %v216_v54, %v210_v62  ;;  %v224_v0 = vmul.f32 %v220_v55, %v209_v61 }
  0x97   : > { %225 = vst [vmem:[#allocation2] sm:$0x7] %v223_v63  ;;  %226 = vst [vmem:[#allocation2 + $0x8] sm:$0x7] %v224_v0  ;;  %v358_v4 = vpop.permute.xlu1 %357  ;;  %v356_v5 = vpop.permute.xlu0 %355 }
  0x98   : > { %v360_v6 = vsel %vm359_vm5, %v356_v5, %v358_v4  ;;  %v361_v7 = vsel %vm359_vm5, %v358_v4, %v356_v5 }
  0x99   : > { %v375_v11 = vmul.f32 %v368_v1, %v360_v6  ;;  %v376_v12 = vmul.f32 %v372_v2, %v361_v7 }
  0x9b   : > { %v379_v16 = vrot.slane %v375_v11, 6  ;;  %v380_v17 = vrot.slane %v376_v12, 6  ;;  %v388_v18 = vpop.permute.xlu1 %387  ;;  %v386_v19 = vpop.permute.xlu0 %385 }
  0x9c   : > { %v390_v20 = vsel %vm389_vm6, %v386_v19, %v388_v18  ;;  %v391_v21 = vsel %vm389_vm6, %v388_v18, %v386_v19  ;;  %v443_v26 = vld [vmem:[#allocation2 + $0x18] sm:$0xff]  ;;  %v442_v29 = vld [vmem:[#allocation2 + $0x10] sm:$0xff] }
  0x9d   : > { %383 = vst [vmem:[#allocation2 + $0x20] sm:$0x1c] %v379_v16  ;;  %384 = vst [vmem:[#allocation2 + $0x28] sm:$0x1c] %v380_v17  ;;  %v405_v22 = vmul.f32 %v398_v13, %v390_v20  ;;  %v406_v23 = vmul.f32 %v402_v14, %v391_v21 }
  0x9e   : > { %v441_v27 = vld [vmem:[#allocation2 + $0x8] sm:$0xff]  ;;  %v440_v28 = vld [vmem:[#allocation2] sm:$0xff] }
  0x9f   : > { %v409_v30 = vrot.slane %v405_v22, 3  ;;  %v410_v31 = vrot.slane %v406_v23, 3  ;;  %v418_v32 = vpop.permute.xlu1 %417  ;;  %v416_v33 = vpop.permute.xlu0 %415  ;;  %v618_v34 = vpack.c.bf16 %v443_v26, %v441_v27  ;;  %v620_v35 = vpack.c.bf16 %v442_v29, %v440_v28 }
  0xa0   : > { %v420_v36 = vsel %vm419_vm7, %v416_v33, %v418_v32  ;;  %v421_v37 = vsel %vm419_vm7, %v418_v32, %v416_v33 }
  0xa1   : > { %413 = vst [vmem:[#allocation2 + $0x20] sm:$0xe0] %v409_v30  ;;  %414 = vst [vmem:[#allocation2 + $0x28] sm:$0xe0] %v410_v31  ;;  %v435_v9 = vmul.f32 %v428_v24, %v420_v36  ;;  %v436_v10 = vmul.f32 %v432_v25, %v421_v37  ;;  %619 = vmatprep.subr.bf16.mxu0 %v618_v34 }
  0xa2   : > { %621 = vmatpush1.bf16.msra.mxu0 %v620_v35 }
  0xa3   : > { %437 = vst [vmem:[#allocation2 + $0x30] sm:$0x7] %v435_v9  ;;  %438 = vst [vmem:[#allocation2 + $0x38] sm:$0x7] %v436_v10 }
  0xa8   : > { %v445_v38 = vld [vmem:[#allocation2 + $0x28] sm:$0xff]  ;;  %v444_v40 = vld [vmem:[#allocation2 + $0x20] sm:$0xff] }
  0xaa   : > { %v447_v39 = vld [vmem:[#allocation2 + $0x38] sm:$0x7]  ;;  %v446_v41 = vld [vmem:[#allocation2 + $0x30] sm:$0x7] }
  0xab   : > { %v622_v42 = vpack.c.bf16 %v447_v39, %v445_v38  ;;  %v625_v43 = vpack.c.bf16 %v446_v41, %v444_v40 }
  0xad   : > { %624 = vmatprep.subr.msk.bf16.mxu0 %vm623_vm10, %v622_v42 }
  0xae   : > { %627 = vmatpush1.bf16.msk.msra.mxu0 %vm623_vm10, %v625_v43 }
  0xb0   : > { %v452_v44 = vpop.permute.xlu0 %451 }
  0xb1   : > { %613 = vmatmul.mubr.msk.f32.vlgmr.msra.gmra.mrb[0].mxu0 %vm454_vm11, %v439_v8 }
 0x184   : > { %v531_v45 = vpop.f32.mrb[0].mxu0 }
 0x185   : > { %v532_v46 = vadd.f32 %v531_v45, %v452_v44  ;;  %v533_v47 = vpop.f32.mrb[1].mxu0 }
 0x186   : > { %v534_v48 = vadd.f32 %v533_v47, %v452_v44 }
 0x187   : > { %v536_v49 = vmax.f32 %v532_v46, 0.0 }
 0x188   : > { %v537_v50 = vmax.f32 %v534_v48, 0.0 }
 0x189   : > { %538 = vst [vmem:[%s197_s28] sm:$0xff] %v536_v49 }
 0x18a   : > { %539 = vst [vmem:[%s197_s28 + $0x8] sm:$0xff] %v537_v50 }
 0x18b PF: > { %s14_s15 = sadd.s32 1, %s656_s15  }
 0x18c   : > { %p11_p4 = scmp.ge.s32.totalorder %s14_s15, 4  }
 0x18e   :  { %13 = sbr.rel (!%p11_p4) target bundleno = 1 (0x1), region = 73 }

</bundles_post_ra>
